<compile_context>
chip_gen: v7x
topology: tpu7x:2x2x1
jax: 0.10.0
libtpu: 0.0.40
codegen_flags: <defaults>
</compile_context>

<pallas_src>
import math

import jax
import jax.numpy as jnp
from jax.experimental import pallas as pl
from jax.experimental.pallas import tpu as pltpu


def _copy_kernel(x_ref, o_ref):
    # Straight pass-through of the current tile (identity / view semantics).
    o_ref[...] = x_ref[...]


def _sublane_granule(dtype) -> int:
    # Sub-32-bit dtypes pack along sublanes: f32 -> 8, bf16 -> 16, int8 -> 32.
    itemsize = jnp.dtype(dtype).itemsize
    return 8 * max(1, 4 // itemsize)


def _round_down(x: int, m: int) -> int:
    return max(m, (x // m) * m)


def _round_up(x: int, m: int) -> int:
    return ((x + m - 1) // m) * m


def _chip_budgets():
    """Return (per_tile_byte_budget, vmem_limit_cap) for this TPU generation."""
    # Conservative default is v7x-safe (64 MiB physical VMEM per TensorCore):
    # 4 MiB tiles -> in+out double-buffered ~16 MiB << 40 MiB limit.
    tile_budget = 4 << 20
    vmem_cap = 40 << 20
    try:
        info = pltpu.get_tpu_info()
        if int(info.vmem_capacity_bytes) >= (100 << 20):
            # v5e / v6e: 128 MiB VMEM -> bigger tiles amortize per-step cost.
            tile_budget = 8 << 20
            vmem_cap = 64 << 20
    except Exception:
        pass
    return tile_budget, vmem_cap


def _lane_dense_2d(m: int, n: int):
    """Refactor m*n contiguous elements into a lane-dense (rows, L) split.

    Prefers L as a large multiple of 128 (unmasked vst); falls back to the
    raw (m, n) split only when no 128-divisible factorization exists.
    """
    total = m * n
    if n >= 128 and n % 128 == 0:
        return m, n
    if total % 128 != 0:
        return m, n  # no lane-dense factorization; masked stores, still correct
    # Largest L <= 8192 that is a multiple of 128 and divides total
    # (L = 128 always qualifies, so the loop terminates with a hit).
    L = min(8192, (total // 128) * 128)
    L = (L // 128) * 128
    while L >= 128:
        if total % L == 0:
            return total // L, L
        L -= 128
    return m, n  # unreachable, defensive


def _pallas_copy_2d(x2d, tile_budget: int, vmem_cap: int):
    """Tiled identity copy of a 2D array through a Pallas TPU kernel."""
    M, N = x2d.shape
    dtype = x2d.dtype
    itemsize = jnp.dtype(dtype).itemsize
    granule = _sublane_granule(dtype)

    # Lane dim: as wide as the byte budget allows at the minimum sublane count
    # (favors lane-dense, unmasked stores); full extent is always legal.
    bn_cap = _round_down(max(128, tile_budget // (granule * itemsize)), 128)
    bn = N if N <= bn_cap else bn_cap
    # Sublane dim: fill the remaining byte budget.
    bm_cap = max(granule, ((tile_budget // max(1, bn * itemsize)) // granule) * granule)
    bm = M if M <= bm_cap else bm_cap

    # Don't collapse medium/large inputs to grid=(1,1): with two tiles, v7x's
    # two TensorCores can each drive their own DMA stream ("parallel" axes).
    # On 1-TC chips this just adds one cheap grid step.
    if bm >= M and bn >= N and M * N * itemsize >= (1 << 20):
        if M > granule:
            bm = _round_up((M + 1) // 2, granule)   # < M by construction
        elif N > 128:
            bn = _round_up((N + 1) // 2, 128)       # < N by construction

    # VMEM: in + out, double-buffered, plus headroom; clamp to the chip cap.
    vmem_bytes = 4 * bm * bn * itemsize + (2 << 20)
    vmem_bytes = int(min(max(vmem_bytes, 4 << 20), vmem_cap))

    grid = (pl.cdiv(M, bm), pl.cdiv(N, bn))
    cost = pl.CostEstimate(
        flops=0, transcendentals=0, bytes_accessed=2 * M * N * itemsize
    )
    return pl.pallas_call(
        _copy_kernel,
        out_shape=jax.ShapeDtypeStruct((M, N), dtype),
        grid=grid,
        in_specs=[pl.BlockSpec((bm, bn), lambda i, j: (i, j))],
        out_specs=pl.BlockSpec((bm, bn), lambda i, j: (i, j)),
        compiler_params=pltpu.CompilerParams(
            dimension_semantics=("parallel", "parallel"),
            vmem_limit_bytes=vmem_bytes,
        ),
        cost_estimate=cost,
    )(x2d)


def view_forward(x, dim: int, *, use_pallas_copy: bool = False):
    """JAX equivalent of View(dim).forward(x).

    Default path is a metadata-only jnp.reshape (the fastest possible
    implementation on every TPU generation).  Set use_pallas_copy=True to push
    the bytes through the tiled Pallas identity-copy kernel instead.
    """
    xdim = x.ndim
    # Mirrors the PyTorch expression exactly (including keep <= 0 corners,
    # where Python tuple slicing behaves identically to torch.Size slicing).
    keep = min(xdim, dim) - 1
    lead = x.shape[:keep]
    rest_axes = x.shape[keep:]
    rest = int(math.prod(rest_axes)) if rest_axes else 1
    trailing_ones = (1,) * max(dim - xdim, 0)
    out_shape = (*lead, rest, *trailing_ones)

    if not use_pallas_copy or x.size == 0:
        # Metadata-only: zero HBM traffic (also guards 0-sized inputs, which
        # would otherwise produce a 0-extent block in the kernel path).
        return jnp.reshape(x, out_shape)

    # Explicit data-path variant: repack the contiguous buffer into a
    # lane-dense 2D layout, copy, then restore the target view shape.
    m = int(math.prod(lead)) if lead else 1
    rows, lanes = _lane_dense_2d(m, rest)
    tile_budget, vmem_cap = _chip_budgets()
    x2d = jnp.reshape(x, (rows, lanes))
    y2d = _pallas_copy_2d(x2d, tile_budget, vmem_cap)
    return jnp.reshape(y2d, out_shape)


if __name__ == "__main__":
    key = jax.random.PRNGKey(0)
    # Small NCHW-like input, consistent with typical usage of View(dim=2):
    # (2, 4, 16, 16) -> (2, 1024)
    x = jax.random.normal(key, (2, 4, 16, 16), dtype=jnp.float32)
    dim = 2
    ref = jnp.reshape(x, (2, -1))

    # Default (recommended) path: metadata-only reshape.
    out_fast = jax.block_until_ready(view_forward(x, dim))
    assert out_fast.shape == ref.shape and out_fast.dtype == ref.dtype
    assert bool(jnp.array_equal(out_fast, ref))

    # Explicit Pallas copy path (lane-dense, byte-budgeted tiles).
    out_copy = jax.block_until_ready(view_forward(x, dim, use_pallas_copy=True))
    assert out_copy.shape == ref.shape and out_copy.dtype == ref.dtype
    assert bool(jnp.array_equal(out_copy, ref))

    # dim > x.ndim branch (trailing singleton dims) with a sub-32-bit dtype.
    # rest=8 and total=16 have no 128-divisible factorization -> falls back to
    # masked stores (correct; not a throughput case).
    x2 = jax.random.normal(jax.random.PRNGKey(1), (2, 8), dtype=jnp.bfloat16)
    out2 = jax.block_until_ready(view_forward(x2, 3, use_pallas_copy=True))
    ref2 = jnp.reshape(x2, (2, 8, 1))
    assert out2.shape == ref2.shape and out2.dtype == ref2.dtype
    assert bool(jnp.array_equal(out2, ref2))

    # Non-128-multiple `rest` that the lane-dense repack handles:
    # (16, 24) -> flat 384 elements -> copied as (1, 384) -> (16, 24).
    x3 = jax.random.normal(jax.random.PRNGKey(2), (16, 24), dtype=jnp.float32)
    out3 = jax.block_until_ready(view_forward(x3, 2, use_pallas_copy=True))
    ref3 = jnp.reshape(x3, (16, -1))
    assert out3.shape == ref3.shape and out3.dtype == ref3.dtype
    assert bool(jnp.array_equal(out3, ref3))

    print("KERNEL_OK")
</pallas_src>

<mosaic_0001>
module attributes {stable_mosaic.version = 11 : i64} {
  func.func @_copy_kernel(%arg0: i32, %arg1: i32, %arg2: memref<2x1024xf32, #tpu.memory_space<vmem>>, %arg3: memref<2x1024xf32, #tpu.memory_space<vmem>>) attributes {dimension_semantics = [#tpu.dimension_semantics<parallel>, #tpu.dimension_semantics<parallel>], iteration_bounds = array<i64: 1, 1>, scalar_prefetch = 0 : i64, scratch_operands = 0 : i64, tpu.core_type = #tpu.core_type<tc>, window_params = [{transform_indices = @transform_0, window_bounds = array<i64: 2, 1024>}, {transform_indices = @transform_1, window_bounds = array<i64: 2, 1024>}]} {
    %c0 = arith.constant 0 : index
    %c0_0 = arith.constant 0 : index
    %0 = vector.load %arg2[%c0, %c0_0] : memref<2x1024xf32, #tpu.memory_space<vmem>>, vector<2x1024xf32>
    %c0_1 = arith.constant 0 : index
    %c0_2 = arith.constant 0 : index
    %1 = vector.load %arg3[%c0_1, %c0_2] : memref<2x1024xf32, #tpu.memory_space<vmem>>, vector<2x1024xf32>
    tpu.vector_store %arg3[%c0_1, %c0_2], %0 {strides = array<i32>} : memref<2x1024xf32, #tpu.memory_space<vmem>>, vector<2x1024xf32>,
    return
  }
  func.func @transform_0(%arg0: i32, %arg1: i32) -> (i32, i32) {
    %c0_i32 = arith.constant 0 : i32
    return %arg0, %arg1 : i32, i32
  }
  func.func @transform_1(%arg0: i32, %arg1: i32) -> (i32, i32) {
    %c0_i32 = arith.constant 0 : i32
    return %arg0, %arg1 : i32, i32
  }
}

</mosaic_0001>

<bundles_post_ra>
// kernel: tpu_custom_call.1
= control target key start
LH: loop header
LB: loop body
LE: loop exit
PB: predicated region body
PF: predicated region fallthrough
CT: control target
= control target key end

     0   :  { %6 = vsyncpa [#allocation3], 0  ;;  %s126_s0 = inlined_call_operand.hbm [shape: f32[2,1024], index: 0, kind: input, shape index: {}]   ;;  %s127_s1 = inlined_call_operand.hbm [shape: f32[2,1024], index: 1, kind: output, shape index: {}]  }
   0x1   :  { %7 = vsyncpa [#allocation4], 0  ;;  %s90_s6 = smov [#allocation2]   ;;  %s42_s10 = scalar_lea.hbm %s126_s0, 256 }
   0x2   :  { %s14_s7 = sshll.u32 %s90_s6, 4  ;;  %p43_p0 = scmp.ne.s32.totalorder %s126_s0, %s42_s10  ;;  %s15_s7 = int_to_ptr.vmem [resolvable:$true] %s14_s7 }
   0x3   :  { %p46_p1 = scmp.lt.u32.totalorder %s42_s10, %s126_s0 }
   0x5   :  { %p48_p2 = pnand %p46_p1, %p43_p0 }
   0x7   :  { %51 = shalt.err (!%p48_p2)
}
   0x8   :  { %s52_s15 = scalar_lea.vmem %s15_s7, 256  ;;  %p57_p4 = scmp.lt.s32.totalorder %s15_s7, %s15_s7 }
   0x9   :  { %p53_p3 = scmp.ne.s32.totalorder %s15_s7, %s52_s15  ;;  %p58_p5 = scmp.lt.s32.totalorder %s52_s15, %s52_s15 }
   0xb   :  { %p59_p6 = por %p58_p5, %p57_p4 }
   0xd   :  { %p60_p7 = pnand %p59_p6, %p53_p3 }
   0xf   :  { %63 = shalt.err (!%p60_p7)
}
  0x10   :  { %17 = dma.hbm_to_vmem [thread:$0]  %s126_s0, 256, %s15_s7, [#allocation3]  }
  0x11   :  { %86 = dma.done.wait [#allocation3], 256  }
  0x12   :  { %87 = vsyncadd [#allocation3], 4294967040  ;;  %s91_s18 = smov [#allocation5]   ;;  %v21_v0 = vld [vmem:[#allocation2] sm:$0xff]  ;;  %v22_v1 = vld [vmem:[#allocation2 + $0x8] sm:$0xff] }
  0x13   :  { %s31_s19 = sshll.u32 %s91_s18, 4  ;;  %23 = vst [vmem:[#allocation5] sm:$0xff] %v21_v0  ;;  %24 = vst [vmem:[#allocation5 + $0x8] sm:$0xff] %v22_v1  ;;  %s32_s19 = int_to_ptr.vmem [resolvable:$true] %s31_s19 }
  0x14   :  { %s64_s20 = scalar_lea.vmem %s32_s19, 256  ;;  %p69_p9 = scmp.lt.s32.totalorder %s32_s19, %s32_s19 }
  0x15   :  { %p65_p8 = scmp.ne.s32.totalorder %s32_s19, %s64_s20  ;;  %p70_p10 = scmp.lt.s32.totalorder %s64_s20, %s64_s20 }
  0x17   :  { %p71_p11 = por %p70_p10, %p69_p9 }
  0x19   :  { %p72_p12 = pnand %p71_p11, %p65_p8 }
  0x1b   :  { %75 = shalt.err (!%p72_p12)
}
  0x1c   :  { %s76_s0 = scalar_lea.hbm %s127_s1, 256 }
  0x1d   :  { %p77_p13 = scmp.ne.s32.totalorder %s127_s1, %s76_s0  ;;  %p80_p0 = scmp.lt.u32.totalorder %s76_s0, %s127_s1 }
  0x1f   :  { %p82_p1 = pnand %p80_p0, %p77_p13 }
  0x21   :  { %85 = shalt.err (!%p82_p1)
}
  0x22   :  { %34 = dma.vmem_to_hbm [thread:$0]  %s32_s19, 256, %s127_s1, [#allocation4]  }
  0x23   :  { %88 = dma.done.wait [#allocation4], 256  }
  0x24   :  { %89 = vsyncadd [#allocation4], 4294967040 }
  0x25   :  { %38 = vsyncpa [#allocation3], 1 }
  0x26   :  { %39 = vsyncpa [#allocation4], 1 }

</bundles_post_ra>
